<compile_context>
chip_gen: v6e
topology: v6e:2x2x1
jax: 0.10.0
libtpu: 0.0.40
codegen_flags: <defaults>
</compile_context>

<pallas_src>
import jax
import jax.numpy as jnp
from jax.experimental import pallas as pl
from jax.experimental.pallas import tpu as pltpu


def _conv1x1_chain_kernel(x_ref, w_ref, b_ref, o_ref):
    """Fused 1x1-conv (+ zero padding already applied to x) + elementwise chain.

    x_ref: (N, Cin, H+2, W+2) f32 in VMEM  (zero-padded input)
    w_ref: (Cout*Cin,)        f32 in SMEM  (row-major [co, ci])
    b_ref: (Cout,)            f32 in SMEM
    o_ref: (N, Cout, H+2, W+2) f32 in VMEM
    """
    n, cin, hp, wp = x_ref.shape
    cout = o_ref.shape[1]

    # Hoist every SMEM scalar read (and its implicit vreg broadcast) out of the
    # vector work: 9 weights + 3 biases, read exactly once.
    w = [[w_ref[co * cin + ci] for ci in range(cin)] for co in range(cout)]
    b = [b_ref[co] for co in range(cout)]

    x = x_ref[...]  # single load of the whole padded block

    def v1_channel(co):
        acc = w[co][0] * x[:, 0]
        for ci in range(1, cin):
            acc = acc + w[co][ci] * x[:, ci]
        return acc + b[co]

    # One (N, Cout, Hp, Wp) slab; stack is along a major (untiled) axis -> cheap.
    v1 = jnp.stack([v1_channel(co) for co in range(cout)], axis=1)

    # v2 = v1 + 3 ; v3 = min(v2, 0) ; v4 = min(v3, 6) == v3 (since v3 <= 0)
    v3 = jnp.minimum(v1 + 3.0, 0.0)

    # v6 = v1 * v4 / 6   -> single dense store of the complete padded output.
    o_ref[...] = (v1 * v3 * (1.0 / 6.0)).astype(o_ref.dtype)


@jax.jit
def model_forward(x, weight, bias):
    """x: (N, Cin, H, W) f32; weight: (Cout, Cin, 1, 1) or (Cout, Cin); bias: (Cout,)."""
    n, cin, h, w_sp = x.shape
    cout = bias.shape[0]
    hp, wp = h + 2, w_sp + 2

    # Accept torch-style (Cout, Cin, 1, 1) weights; flatten to 1-D for SMEM.
    w_flat = weight.reshape(-1).astype(jnp.float32)      # (Cout*Cin,)
    b_flat = bias.reshape(-1).astype(jnp.float32)        # (Cout,)

    # Zero-pad the input once (cheap XLA producer op, fused into the same jit):
    # for a 1x1 conv with padding=1, conv(x)[y, x] = W . x_pad[y, x] + b everywhere,
    # so the kernel can emit the full padded output with no border special-casing.
    x_pad = jnp.pad(x.astype(jnp.float32), ((0, 0), (0, 0), (1, 1), (1, 1)))

    return pl.pallas_call(
        _conv1x1_chain_kernel,
        out_shape=jax.ShapeDtypeStruct((n, cout, hp, wp), jnp.float32),
        in_specs=[
            pl.BlockSpec(memory_space=pltpu.MemorySpace.VMEM),   # x_pad (whole block)
            pl.BlockSpec(memory_space=pltpu.MemorySpace.SMEM),   # weight scalars (1-D)
            pl.BlockSpec(memory_space=pltpu.MemorySpace.SMEM),   # bias scalars (1-D)
        ],
        out_specs=pl.BlockSpec(memory_space=pltpu.MemorySpace.VMEM),
    )(x_pad, w_flat, b_flat)


def _reference(x, weight, bias):
    w2 = weight.reshape(weight.shape[0], -1)
    x_pad = jnp.pad(x, ((0, 0), (0, 0), (1, 1), (1, 1)))
    v1 = jnp.einsum("oc,nchw->nohw", w2, x_pad) + bias[None, :, None, None]
    v2 = v1 + 3.0
    v3 = jnp.minimum(v2, 0.0)
    v4 = jnp.minimum(v3, 6.0)
    return v1 * v4 / 6.0


if __name__ == "__main__":
    key = jax.random.PRNGKey(0)
    kx, kw, kb = jax.random.split(key, 3)

    # Small shapes consistent with Conv2d(3, 3, 1): batch=2, C=3, spatial=16.
    x = jax.random.normal(kx, (2, 3, 16, 16), dtype=jnp.float32)

    # Torch-shaped conv params, U(-1/sqrt(fan_in), 1/sqrt(fan_in)) init.
    fan_in = 3  # Cin * kH * kW = 3 * 1 * 1
    bound = 1.0 / (fan_in ** 0.5)
    weight = jax.random.uniform(kw, (3, 3, 1, 1), jnp.float32, -bound, bound)
    bias = jax.random.uniform(kb, (3,), jnp.float32, -bound, bound)

    out = jax.block_until_ready(model_forward(x, weight, bias))
    ref = _reference(x, weight, bias)

    assert out.shape == (2, 3, 18, 18), out.shape
    assert jnp.allclose(out, ref, atol=1e-5, rtol=1e-5), float(
        jnp.max(jnp.abs(out - ref)))
    print("KERNEL_OK")
</pallas_src>

<mosaic_0001>
module attributes {stable_mosaic.version = 11 : i64} {
  func.func @_conv1x1_chain_kernel(%arg0: memref<2x3x18x18xf32, #tpu.memory_space<vmem>>, %arg1: memref<9xf32, #tpu.memory_space<smem>>, %arg2: memref<3xf32, #tpu.memory_space<smem>>, %arg3: memref<2x3x18x18xf32, #tpu.memory_space<vmem>>) attributes {dimension_semantics = [], scalar_prefetch = 0 : i64, scratch_operands = 0 : i64, tpu.core_type = #tpu.core_type<tc>} {
    %c0 = arith.constant 0 : index
    %0 = memref.load %arg1[%c0] : memref<9xf32, #tpu.memory_space<smem>>
    %c1 = arith.constant 1 : index
    %1 = memref.load %arg1[%c1] : memref<9xf32, #tpu.memory_space<smem>>
    %c2 = arith.constant 2 : index
    %2 = memref.load %arg1[%c2] : memref<9xf32, #tpu.memory_space<smem>>
    %c3 = arith.constant 3 : index
    %3 = memref.load %arg1[%c3] : memref<9xf32, #tpu.memory_space<smem>>
    %c4 = arith.constant 4 : index
    %4 = memref.load %arg1[%c4] : memref<9xf32, #tpu.memory_space<smem>>
    %c5 = arith.constant 5 : index
    %5 = memref.load %arg1[%c5] : memref<9xf32, #tpu.memory_space<smem>>
    %c6 = arith.constant 6 : index
    %6 = memref.load %arg1[%c6] : memref<9xf32, #tpu.memory_space<smem>>
    %c7 = arith.constant 7 : index
    %7 = memref.load %arg1[%c7] : memref<9xf32, #tpu.memory_space<smem>>
    %c8 = arith.constant 8 : index
    %8 = memref.load %arg1[%c8] : memref<9xf32, #tpu.memory_space<smem>>
    %c0_0 = arith.constant 0 : index
    %9 = memref.load %arg2[%c0_0] : memref<3xf32, #tpu.memory_space<smem>>
    %c1_1 = arith.constant 1 : index
    %10 = memref.load %arg2[%c1_1] : memref<3xf32, #tpu.memory_space<smem>>
    %c2_2 = arith.constant 2 : index
    %11 = memref.load %arg2[%c2_2] : memref<3xf32, #tpu.memory_space<smem>>
    %c0_3 = arith.constant 0 : index
    %c0_4 = arith.constant 0 : index
    %c0_5 = arith.constant 0 : index
    %c0_6 = arith.constant 0 : index
    %12 = vector.load %arg0[%c0_3, %c0_4, %c0_5, %c0_6] : memref<2x3x18x18xf32, #tpu.memory_space<vmem>>, vector<2x3x18x18xf32>
    %13 = vector.extract_strided_slice %12 {offsets = [0, 0, 0, 0], sizes = [2, 1, 18, 18], strides = [1, 1, 1, 1]} : vector<2x3x18x18xf32> to vector<2x1x18x18xf32>
    %14 = vector.shape_cast %13 : vector<2x1x18x18xf32> to vector<2x18x18xf32>
    %15 = vector.broadcast %0 : f32 to vector<2x18x18xf32>
    %16 = arith.mulf %15, %14 : vector<2x18x18xf32>
    %17 = vector.extract_strided_slice %12 {offsets = [0, 1, 0, 0], sizes = [2, 1, 18, 18], strides = [1, 1, 1, 1]} : vector<2x3x18x18xf32> to vector<2x1x18x18xf32>
    %18 = vector.shape_cast %17 : vector<2x1x18x18xf32> to vector<2x18x18xf32>
    %19 = vector.broadcast %1 : f32 to vector<2x18x18xf32>
    %20 = arith.mulf %19, %18 : vector<2x18x18xf32>
    %21 = arith.addf %16, %20 : vector<2x18x18xf32>
    %22 = vector.extract_strided_slice %12 {offsets = [0, 2, 0, 0], sizes = [2, 1, 18, 18], strides = [1, 1, 1, 1]} : vector<2x3x18x18xf32> to vector<2x1x18x18xf32>
    %23 = vector.shape_cast %22 : vector<2x1x18x18xf32> to vector<2x18x18xf32>
    %24 = vector.broadcast %2 : f32 to vector<2x18x18xf32>
    %25 = arith.mulf %24, %23 : vector<2x18x18xf32>
    %26 = arith.addf %21, %25 : vector<2x18x18xf32>
    %27 = vector.broadcast %9 : f32 to vector<2x18x18xf32>
    %28 = arith.addf %26, %27 : vector<2x18x18xf32>
    %29 = vector.extract_strided_slice %12 {offsets = [0, 0, 0, 0], sizes = [2, 1, 18, 18], strides = [1, 1, 1, 1]} : vector<2x3x18x18xf32> to vector<2x1x18x18xf32>
    %30 = vector.shape_cast %29 : vector<2x1x18x18xf32> to vector<2x18x18xf32>
    %31 = vector.broadcast %3 : f32 to vector<2x18x18xf32>
    %32 = arith.mulf %31, %30 : vector<2x18x18xf32>
    %33 = vector.extract_strided_slice %12 {offsets = [0, 1, 0, 0], sizes = [2, 1, 18, 18], strides = [1, 1, 1, 1]} : vector<2x3x18x18xf32> to vector<2x1x18x18xf32>
    %34 = vector.shape_cast %33 : vector<2x1x18x18xf32> to vector<2x18x18xf32>
    %35 = vector.broadcast %4 : f32 to vector<2x18x18xf32>
    %36 = arith.mulf %35, %34 : vector<2x18x18xf32>
    %37 = arith.addf %32, %36 : vector<2x18x18xf32>
    %38 = vector.extract_strided_slice %12 {offsets = [0, 2, 0, 0], sizes = [2, 1, 18, 18], strides = [1, 1, 1, 1]} : vector<2x3x18x18xf32> to vector<2x1x18x18xf32>
    %39 = vector.shape_cast %38 : vector<2x1x18x18xf32> to vector<2x18x18xf32>
    %40 = vector.broadcast %5 : f32 to vector<2x18x18xf32>
    %41 = arith.mulf %40, %39 : vector<2x18x18xf32>
    %42 = arith.addf %37, %41 : vector<2x18x18xf32>
    %43 = vector.broadcast %10 : f32 to vector<2x18x18xf32>
    %44 = arith.addf %42, %43 : vector<2x18x18xf32>
    %45 = vector.extract_strided_slice %12 {offsets = [0, 0, 0, 0], sizes = [2, 1, 18, 18], strides = [1, 1, 1, 1]} : vector<2x3x18x18xf32> to vector<2x1x18x18xf32>
    %46 = vector.shape_cast %45 : vector<2x1x18x18xf32> to vector<2x18x18xf32>
    %47 = vector.broadcast %6 : f32 to vector<2x18x18xf32>
    %48 = arith.mulf %47, %46 : vector<2x18x18xf32>
    %49 = vector.extract_strided_slice %12 {offsets = [0, 1, 0, 0], sizes = [2, 1, 18, 18], strides = [1, 1, 1, 1]} : vector<2x3x18x18xf32> to vector<2x1x18x18xf32>
    %50 = vector.shape_cast %49 : vector<2x1x18x18xf32> to vector<2x18x18xf32>
    %51 = vector.broadcast %7 : f32 to vector<2x18x18xf32>
    %52 = arith.mulf %51, %50 : vector<2x18x18xf32>
    %53 = arith.addf %48, %52 : vector<2x18x18xf32>
    %54 = vector.extract_strided_slice %12 {offsets = [0, 2, 0, 0], sizes = [2, 1, 18, 18], strides = [1, 1, 1, 1]} : vector<2x3x18x18xf32> to vector<2x1x18x18xf32>
    %55 = vector.shape_cast %54 : vector<2x1x18x18xf32> to vector<2x18x18xf32>
    %56 = vector.broadcast %8 : f32 to vector<2x18x18xf32>
    %57 = arith.mulf %56, %55 : vector<2x18x18xf32>
    %58 = arith.addf %53, %57 : vector<2x18x18xf32>
    %59 = vector.broadcast %11 : f32 to vector<2x18x18xf32>
    %60 = arith.addf %58, %59 : vector<2x18x18xf32>
    %61 = vector.shape_cast %28 : vector<2x18x18xf32> to vector<2x1x18x18xf32>
    %62 = vector.shape_cast %44 : vector<2x18x18xf32> to vector<2x1x18x18xf32>
    %63 = vector.shape_cast %60 : vector<2x18x18xf32> to vector<2x1x18x18xf32>
    %64 = tpu.concatenate %61, %62, %63 in 1 : vector<2x1x18x18xf32>, vector<2x1x18x18xf32>, vector<2x1x18x18xf32> -> vector<2x3x18x18xf32>
    %cst = arith.constant 3.000000e+00 : f32
    %65 = vector.broadcast %cst : f32 to vector<2x3x18x18xf32>
    %66 = arith.addf %64, %65 : vector<2x3x18x18xf32>
    %cst_7 = arith.constant 0.000000e+00 : f32
    %67 = vector.broadcast %cst_7 : f32 to vector<2x3x18x18xf32>
    %68 = arith.minimumf %66, %67 : vector<2x3x18x18xf32>
    %69 = arith.mulf %64, %68 : vector<2x3x18x18xf32>
    %cst_8 = arith.constant 0.166666672 : f32
    %70 = vector.broadcast %cst_8 : f32 to vector<2x3x18x18xf32>
    %71 = arith.mulf %69, %70 : vector<2x3x18x18xf32>
    %c0_9 = arith.constant 0 : index
    %c0_10 = arith.constant 0 : index
    %c0_11 = arith.constant 0 : index
    %c0_12 = arith.constant 0 : index
    %72 = vector.load %arg3[%c0_9, %c0_10, %c0_11, %c0_12] : memref<2x3x18x18xf32, #tpu.memory_space<vmem>>, vector<2x3x18x18xf32>
    tpu.vector_store %arg3[%c0_9, %c0_10, %c0_11, %c0_12], %71 {strides = array<i32>} : memref<2x3x18x18xf32, #tpu.memory_space<vmem>>, vector<2x3x18x18xf32>,
    return
  }
}

</mosaic_0001>

<bundles_post_ra>
// kernel: model_forward.1
= control target key start
LH: loop header
LB: loop body
LE: loop exit
PB: predicated region body
PF: predicated region fallthrough
CT: control target
= control target key end

     0   :  { %8 = vsyncpa [#allocation3], 0  ;;  %s679_s0 = inlined_call_operand.vmem [shape: f32[2,3,18,18], index: 0, kind: input, shape index: {}]   ;;  %s680_s1 = inlined_call_operand.vmem [shape: f32[9], index: 1, kind: input, shape index: {}]   ;;  %s681_s2 = inlined_call_operand.vmem [shape: f32[3], index: 2, kind: input, shape index: {}]   ;;  %s682_s3 = inlined_call_operand.vmem [shape: f32[2,3,18,18], index: 3, kind: output, shape index: {}]  }
   0x1   :  { %s18_s14 = sshll.u32 %s680_s1, 4  ;;  %s19_s14 = int_to_ptr.vmem [resolvable:$true] %s18_s14 }
   0x2   :  { %9 = vsyncpa [#allocation5], 0  ;;  %s28_s17 = sshll.u32 %s681_s2, 4  ;;  %s299_s18 = scalar_lea.vmem %s19_s14, 16  ;;  %s29_s17 = int_to_ptr.vmem [resolvable:$true] %s28_s17 }
   0x3   :  { %p300_p0 = scmp.ne.s32.totalorder %s19_s14, %s299_s18  ;;  %p304_p1 = scmp.lt.s32.totalorder %s19_s14, %s19_s14 }
   0x4   :  { %p305_p2 = scmp.lt.s32.totalorder %s299_s18, %s299_s18 }
   0x6   :  { %p306_p3 = por %p305_p2, %p304_p1 }
   0x8   :  { %p307_p4 = pnand %p306_p3, %p300_p0 }
   0xa   :  { %310 = shalt.err (!%p307_p4)
}
   0xb   :  { %s327_s19 = smov [#allocation2]   ;;  %s311_s20 = scalar_lea.vmem %s29_s17, 16 }
   0xc   :  { %21 = dma.vmem_to_smem %s19_s14, 16, %s327_s19, [#allocation3]  }
   0xd   :  { %p312_p5 = scmp.ne.s32.totalorder %s29_s17, %s311_s20  ;;  %p316_p6 = scmp.lt.s32.totalorder %s29_s17, %s29_s17 }
   0xe   :  { %p317_p7 = scmp.lt.s32.totalorder %s311_s20, %s311_s20 }
  0x10   :  { %p318_p8 = por %p317_p7, %p316_p6 }
  0x12   :  { %p319_p9 = pnand %p318_p8, %p312_p5 }
  0x14   :  { %322 = shalt.err (!%p319_p9)
}
  0x15   :  { %s328_s1 = smov [#allocation4]  }
  0x16   :  { %31 = dma.vmem_to_smem %s29_s17, 16, %s328_s1, [#allocation5]  }
  0x17   :  { %323 = dma.done.wait [#allocation3], 16  }
  0x18   :  { %324 = vsyncadd [#allocation3], 4294967280 }
  0x19   :  { %325 = dma.done.wait [#allocation5], 16  }
  0x1a   :  { %326 = vsyncadd [#allocation5], 4294967280 }
  0x1b   :  { %38 = sfence }
  0x1c   :  { %s39_s2 = sld [smem:[#allocation2]]  ;;  %v358_v0 = vld [vmem:[%s679_s0] sm:$0xff]  ;;  %v363_v1 = vld [vmem:[%s679_s0 + $0x8] sm:$0xff]  ;;  %v368_v2 = vld [vmem:[%s679_s0 + $0x10] sm:$0x3]  ;;  %vm261_vm0 = vcmask 146432  }
  0x1d   :  { %s287_s21 = sld [smem:[#allocation2 + $0x1]]  ;;  %v373_v3 = vld [vmem:[%s679_s0 + $0x18] sm:$0xff]  ;;  %v378_v4 = vld [vmem:[%s679_s0 + $0x20] sm:$0xff]  ;;  %v383_v5 = vld [vmem:[%s679_s0 + $0x28] sm:$0x3]  ;;  %vm264_vm1 = vcmask 140288  }
  0x1e   :  { %s288_s22 = sld [smem:[#allocation2 + $0x2]]  ;;  %v388_v6 = vld [vmem:[%s679_s0 + $0x30] sm:$0xff]  ;;  %v395_v8 = vld [vmem:[%s679_s0 + $0x38] sm:$0xff]  ;;  %v400_v9 = vld [vmem:[%s679_s0 + $0x40] sm:$0x3] }
  0x1f   :  { %s48_s23 = sld [smem:[#allocation4]] }
  0x20   :  { %s289_s30 = sld [smem:[#allocation2 + $0x3]] }
  0x21   :  { %s290_s10 = sld [smem:[#allocation2 + $0x4]] }
  0x22   :  { %v390_v7 = vstv %s39_s2  ;;  %s291_s17 = sld [smem:[#allocation2 + $0x5]] }
  0x23   :  { %v70_v10 = vmul.f32 %v390_v7, %v358_v0  ;;  %v404_v11 = vstv %s287_s21  ;;  %v71_v12 = vmul.f32 %v390_v7, %v363_v1  ;;  %v72_v13 = vmul.f32 %v390_v7, %v368_v2  ;;  %s295_s18 = sld [smem:[#allocation4 + $0x1]] }
  0x24   :  { %v77_v14 = vmul.f32 %v404_v11, %v373_v3  ;;  %v412_v15 = vstv %s288_s22  ;;  %v78_v16 = vmul.f32 %v404_v11, %v378_v4  ;;  %v79_v17 = vmul.f32 %v404_v11, %v383_v5  ;;  %s418_s19 = sld [smem:[#allocation2 + $0x6]] }
  0x25   :  { %v90_v18 = vmul.f32 %v412_v15, %v388_v6  ;;  %v422_v19 = vstv %s48_s23  ;;  %v91_v20 = vmul.f32 %v412_v15, %v395_v8  ;;  %v92_v21 = vmul.f32 %v412_v15, %v400_v9  ;;  %s428_s20 = sld [smem:[#allocation2 + $0x7]] }
  0x26   :  { %v83_v22 = vadd.f32 %v77_v14, %v70_v10  ;;  %v84_v23 = vadd.f32 %v78_v16, %v71_v12  ;;  %v85_v24 = vadd.f32 %v79_v17, %v72_v13  ;;  %v430_v25 = vstv %s289_s30  ;;  %s450_s1 = sld [smem:[#allocation2 + $0x8]] }
  0x27   :  { %v110_v26 = vmul.f32 %v430_v25, %v358_v0  ;;  %v434_v27 = vstv %s290_s10  ;;  %v111_v28 = vmul.f32 %v430_v25, %v363_v1  ;;  %v112_v29 = vmul.f32 %v430_v25, %v368_v2  ;;  %s459_s2 = sld [smem:[#allocation4 + $0x2]] }
  0x28   :  { %v96_v30 = vadd.f32 %v90_v18, %v83_v22  ;;  %v97_v31 = vadd.f32 %v91_v20, %v84_v23  ;;  %v98_v32 = vadd.f32 %v92_v21, %v85_v24  ;;  %v117_v33 = vmul.f32 %v434_v27, %v373_v3 }
  0x29   :  { %v442_v34 = vstv %s291_s17  ;;  %v444_v35 = vstv %s295_s18  ;;  %v118_v36 = vmul.f32 %v434_v27, %v378_v4  ;;  %v119_v37 = vmul.f32 %v434_v27, %v383_v5 }
  0x2a   :  { %v103_v38 = vadd.f32 %v422_v19, %v96_v30  ;;  %v104_v39 = vadd.f32 %v422_v19, %v97_v31  ;;  %v105_v40 = vadd.f32 %v422_v19, %v98_v32  ;;  %v123_v41 = vadd.f32 %v117_v33, %v110_v26  ;;  %v505_v30 = vld [vmem:[%s679_s0 + $0x48] sm:$0xff] }
  0x2b   :  { %v130_v42 = vmul.f32 %v442_v34, %v388_v6  ;;  %v124_v43 = vadd.f32 %v118_v36, %v111_v28  ;;  %v131_v44 = vmul.f32 %v442_v34, %v395_v8  ;;  %v125_v45 = vadd.f32 %v119_v37, %v112_v29 }
  0x2c   :  { %v189_v46 = vadd.f32 3.0, %v103_v38  ;;  %v190_v47 = vadd.f32 3.0, %v104_v39  ;;  %v191_v48 = vadd.f32 3.0, %v105_v40  ;;  %v132_v49 = vmul.f32 %v442_v34, %v400_v9 }
  0x2d   :  { %v136_v50 = vadd.f32 %v130_v42, %v123_v41  ;;  %v137_v51 = vadd.f32 %v131_v44, %v124_v43  ;;  %v464_v52 = vstv %s418_s19  ;;  %v467_v53 = vstv %s428_s20 }
  0x2e   :  { %v207_v54 = vmin.f32 %v189_v46, 0.0  ;;  %v208_v55 = vmin.f32 %v190_v47, 0.0  ;;  %v209_v56 = vmin.f32 %v191_v48, 0.0  ;;  %v138_v57 = vadd.f32 %v132_v49, %v125_v45  ;;  %v541_v47 = vld [vmem:[%s679_s0 + $0x80] sm:$0xff]  ;;  %v546_v48 = vld [vmem:[%s679_s0 + $0x58] sm:$0x3] }
  0x2f   :  { %v143_v58 = vadd.f32 %v444_v35, %v136_v50  ;;  %v144_v59 = vadd.f32 %v444_v35, %v137_v51  ;;  %v150_v60 = vmul.f32 %v464_v52, %v358_v0  ;;  %v157_v61 = vmul.f32 %v467_v53, %v373_v3  ;;  %v551_v49 = vld [vmem:[%s679_s0 + $0x70] sm:$0x3] }
  0x30   :  { %v225_v62 = vmul.f32 %v207_v54, %v103_v38  ;;  %v226_v63 = vmul.f32 %v208_v55, %v104_v39  ;;  %v227_v10 = vmul.f32 %v209_v56, %v105_v40  ;;  %v145_v12 = vadd.f32 %v444_v35, %v138_v57  ;;  %v522_v39 = vld [vmem:[%s679_s0 + $0x78] sm:$0xff]  ;;  %v532_v40 = vld [vmem:[%s679_s0 + $0x68] sm:$0xff] }
  0x31   :  { %v192_v13 = vadd.f32 3.0, %v143_v58  ;;  %v193_v14 = vadd.f32 3.0, %v144_v59  ;;  %v163_v16 = vadd.f32 %v157_v61, %v150_v60  ;;  %v477_v17 = vstv %s450_s1  ;;  %v571_v60 = vld [vmem:[%s679_s0 + $0x88] sm:$0x3] }
  0x32   :  { %v243_v18 = vmul.f32 0.16666667, %v225_v62  ;;  %v244_v20 = vmul.f32 0.16666667, %v226_v63  ;;  %v245_v21 = vmul.f32 0.16666667, %v227_v10  ;;  %v170_v0 = vmul.f32 %v477_v17, %v388_v6 }
  0x33   :  { %v210_v22 = vmin.f32 %v192_v13, 0.0  ;;  %v211_v23 = vmin.f32 %v193_v14, 0.0  ;;  %v194_v3 = vadd.f32 3.0, %v145_v12  ;;  %v482_v24 = vstv %s459_s2 }
  0x34   :  { %262 = vst.msk [vmem:[%s682_s3] sm:$0xff] %vm261_vm0, %v243_v18  ;;  %263 = vst.msk [vmem:[%s682_s3 + $0x8] sm:$0xff] %vm261_vm0, %v244_v20  ;;  %v176_v6 = vadd.f32 %v170_v0, %v163_v16  ;;  %v151_v26 = vmul.f32 %v464_v52, %v363_v1  ;;  %v158_v28 = vmul.f32 %v467_v53, %v378_v4  ;;  %v512_v1 = vld [vmem:[%s679_s0 + $0x60] sm:$0xff] }
  0x35   :  { %265 = vst.msk [vmem:[%s682_s3 + $0x10] sm:$0x3] %vm264_vm1, %v245_v21  ;;  %v171_v29 = vmul.f32 %v477_v17, %v395_v8  ;;  %v228_v31 = vmul.f32 %v210_v22, %v143_v58  ;;  %v229_v32 = vmul.f32 %v211_v23, %v144_v59  ;;  %v212_v33 = vmin.f32 %v194_v3, 0.0 }
  0x36   :  { %v152_v36 = vmul.f32 %v464_v52, %v368_v2  ;;  %v183_v4 = vadd.f32 %v482_v24, %v176_v6  ;;  %v164_v37 = vadd.f32 %v158_v28, %v151_v26  ;;  %v159_v8 = vmul.f32 %v467_v53, %v383_v5  ;;  %v527_v2 = vld [vmem:[%s679_s0 + $0x50] sm:$0xff] }
  0x37   :  { %v172_v38 = vmul.f32 %v477_v17, %v400_v9  ;;  %v246_v41 = vmul.f32 0.16666667, %v228_v31  ;;  %v247_v5 = vmul.f32 0.16666667, %v229_v32  ;;  %v230_v42 = vmul.f32 %v212_v33, %v145_v12 }
  0x38   :  { %v73_v9 = vmul.f32 %v390_v7, %v505_v30  ;;  %v195_v43 = vadd.f32 3.0, %v183_v4  ;;  %v177_v44 = vadd.f32 %v171_v29, %v164_v37  ;;  %v165_v45 = vadd.f32 %v159_v8, %v152_v36 }
  0x39   :  { %v80_v46 = vmul.f32 %v404_v11, %v512_v1  ;;  %266 = vst.msk [vmem:[%s682_s3 + $0x18] sm:$0xff] %vm261_vm0, %v246_v41  ;;  %267 = vst.msk [vmem:[%s682_s3 + $0x20] sm:$0xff] %vm261_vm0, %v247_v5  ;;  %v248_v50 = vmul.f32 0.16666667, %v230_v42  ;;  %v93_v51 = vmul.f32 %v412_v15, %v522_v39  ;;  %v74_v54 = vmul.f32 %v390_v7, %v527_v2 }
  0x3a   :  { %v81_v55 = vmul.f32 %v404_v11, %v532_v40  ;;  %v213_v56 = vmin.f32 %v195_v43, 0.0  ;;  %v184_v57 = vadd.f32 %v482_v24, %v177_v44  ;;  %v178_v58 = vadd.f32 %v172_v38, %v165_v45 }
  0x3b   :  { %v86_v59 = vadd.f32 %v80_v46, %v73_v9  ;;  %268 = vst.msk [vmem:[%s682_s3 + $0x28] sm:$0x3] %vm264_vm1, %v248_v50  ;;  %v94_v62 = vmul.f32 %v412_v15, %v541_v47  ;;  %v75_v63 = vmul.f32 %v390_v7, %v546_v48  ;;  %v82_v10 = vmul.f32 %v404_v11, %v551_v49 }
  0x3c   :  { %v87_v61 = vadd.f32 %v81_v55, %v74_v54  ;;  %v231_v12 = vmul.f32 %v213_v56, %v183_v4  ;;  %v196_v13 = vadd.f32 3.0, %v184_v57  ;;  %v185_v14 = vadd.f32 %v482_v24, %v178_v58 }
  0x3d   :  { %v99_v16 = vadd.f32 %v93_v51, %v86_v59  ;;  %v88_v20 = vadd.f32 %v82_v10, %v75_v63  ;;  %v95_v21 = vmul.f32 %v412_v15, %v571_v60  ;;  %v113_v0 = vmul.f32 %v430_v25, %v505_v30 }
  0x3e   :  { %v100_v18 = vadd.f32 %v94_v62, %v87_v61  ;;  %v249_v22 = vmul.f32 0.16666667, %v231_v12  ;;  %v214_v23 = vmin.f32 %v196_v13, 0.0  ;;  %v197_v3 = vadd.f32 3.0, %v185_v14 }
  0x3f   :  { %v106_v7 = vadd.f32 %v422_v19, %v99_v16  ;;  %v101_v6 = vadd.f32 %v95_v21, %v88_v20  ;;  %v120_v26 = vmul.f32 %v434_v27, %v512_v1  ;;  %v133_v28 = vmul.f32 %v442_v34, %v522_v39 }
  0x40   :  { %v107_v11 = vadd.f32 %v422_v19, %v100_v18  ;;  %269 = vst.msk [vmem:[%s682_s3 + $0x30] sm:$0xff] %vm261_vm0, %v249_v22  ;;  %v232_v15 = vmul.f32 %v214_v23, %v184_v57  ;;  %v215_v29 = vmin.f32 %v197_v3, 0.0  ;;  %v114_v32 = vmul.f32 %v430_v25, %v527_v2 }
  0x41   :  { %v198_v31 = vadd.f32 3.0, %v106_v7  ;;  %v108_v36 = vadd.f32 %v422_v19, %v101_v6  ;;  %v126_v4 = vadd.f32 %v120_v26, %v113_v0  ;;  %v121_v37 = vmul.f32 %v434_v27, %v532_v40 }
  0x42   :  { %v199_v33 = vadd.f32 3.0, %v107_v11  ;;  %v250_v8 = vmul.f32 0.16666667, %v232_v15  ;;  %v233_v38 = vmul.f32 %v215_v29, %v185_v14  ;;  %v134_v5 = vmul.f32 %v442_v34, %v541_v47 }
  0x43   :  { %v216_v41 = vmin.f32 %v198_v31, 0.0  ;;  %v200_v9 = vadd.f32 3.0, %v108_v36  ;;  %v139_v43 = vadd.f32 %v133_v28, %v126_v4  ;;  %v127_v44 = vadd.f32 %v121_v37, %v114_v32 }
  0x44   :  { %v217_v42 = vmin.f32 %v199_v33, 0.0  ;;  %270 = vst.msk [vmem:[%s682_s3 + $0x38] sm:$0xff] %vm261_vm0, %v250_v8  ;;  %v251_v19 = vmul.f32 0.16666667, %v233_v38  ;;  %v115_v46 = vmul.f32 %v430_v25, %v546_v48  ;;  %v122_v50 = vmul.f32 %v434_v27, %v551_v49 }
  0x45   :  { %v234_v45 = vmul.f32 %v216_v41, %v106_v7  ;;  %v218_v54 = vmin.f32 %v200_v9, 0.0  ;;  %v146_v55 = vadd.f32 %v444_v35, %v139_v43  ;;  %v140_v56 = vadd.f32 %v134_v5, %v127_v44 }
  0x46   :  { %v235_v51 = vmul.f32 %v217_v42, %v107_v11  ;;  %271 = vst.msk [vmem:[%s682_s3 + $0x40] sm:$0x3] %vm264_vm1, %v251_v19  ;;  %v128_v58 = vadd.f32 %v122_v50, %v115_v46  ;;  %v135_v59 = vmul.f32 %v442_v34, %v571_v60  ;;  %v153_v25 = vmul.f32 %v464_v52, %v505_v30 }
  0x47   :  { %v252_v57 = vmul.f32 0.16666667, %v234_v45  ;;  %v236_v27 = vmul.f32 %v218_v54, %v108_v36  ;;  %v201_v62 = vadd.f32 3.0, %v146_v55  ;;  %v147_v63 = vadd.f32 %v444_v35, %v140_v56 }
  0x48   :  { %v253_v61 = vmul.f32 0.16666667, %v235_v51  ;;  %v141_v10 = vadd.f32 %v135_v59, %v128_v58  ;;  %v160_v12 = vmul.f32 %v467_v53, %v512_v1  ;;  %v173_v34 = vmul.f32 %v477_v17, %v522_v39 }
  0x49   :  { %272 = vst.msk [vmem:[%s682_s3 + $0x48] sm:$0xff] %vm261_vm0, %v252_v57  ;;  %v154_v30 = vmul.f32 %v464_v52, %v527_v2  ;;  %v254_v13 = vmul.f32 0.16666667, %v236_v27  ;;  %v219_v14 = vmin.f32 %v201_v62, 0.0  ;;  %v202_v16 = vadd.f32 3.0, %v147_v63 }
  0x4a   :  { %273 = vst.msk [vmem:[%s682_s3 + $0x50] sm:$0xff] %vm261_vm0, %v253_v61  ;;  %v161_v18 = vmul.f32 %v467_v53, %v532_v40  ;;  %v148_v20 = vadd.f32 %v444_v35, %v141_v10  ;;  %v166_v1 = vadd.f32 %v160_v12, %v153_v25  ;;  %v174_v39 = vmul.f32 %v477_v17, %v541_v47 }
  0x4b   :  { %v155_v2 = vmul.f32 %v464_v52, %v546_v48  ;;  %274 = vst.msk [vmem:[%s682_s3 + $0x58] sm:$0x3] %vm264_vm1, %v254_v13  ;;  %v237_v21 = vmul.f32 %v219_v14, %v146_v55  ;;  %v220_v0 = vmin.f32 %v202_v16, 0.0  ;;  %v162_v40 = vmul.f32 %v467_v53, %v551_v49 }
  0x4c   :  { %v167_v22 = vadd.f32 %v161_v18, %v154_v30  ;;  %v203_v23 = vadd.f32 3.0, %v148_v20  ;;  %v179_v35 = vadd.f32 %v173_v34, %v166_v1  ;;  %v175_v3 = vmul.f32 %v477_v17, %v571_v60 }
  0x4d   :  { %v255_v47 = vmul.f32 0.16666667, %v237_v21  ;;  %v238_v7 = vmul.f32 %v220_v0, %v147_v63  ;;  %v168_v52 = vadd.f32 %v162_v40, %v155_v2 }
  0x4e   :  { %v180_v11 = vadd.f32 %v174_v39, %v167_v22  ;;  %v221_v48 = vmin.f32 %v203_v23, 0.0  ;;  %v186_v6 = vadd.f32 %v482_v24, %v179_v35 }
  0x4f   :  { %275 = vst.msk [vmem:[%s682_s3 + $0x60] sm:$0xff] %vm261_vm0, %v255_v47  ;;  %v256_v26 = vmul.f32 0.16666667, %v238_v7  ;;  %v181_v49 = vadd.f32 %v175_v3, %v168_v52 }
  0x50   :  { %v187_v53 = vadd.f32 %v482_v24, %v180_v11  ;;  %v239_v28 = vmul.f32 %v221_v48, %v148_v20  ;;  %v204_v15 = vadd.f32 3.0, %v186_v6 }
  0x51   :  { %276 = vst.msk [vmem:[%s682_s3 + $0x68] sm:$0xff] %vm261_vm0, %v256_v26  ;;  %v188_v60 = vadd.f32 %v482_v24, %v181_v49 }
  0x52   :  { %v205_v17 = vadd.f32 3.0, %v187_v53  ;;  %v257_v29 = vmul.f32 0.16666667, %v239_v28  ;;  %v222_v31 = vmin.f32 %v204_v15, 0.0 }
  0x53   :  { %v206_v33 = vadd.f32 3.0, %v188_v60 }
  0x54   :  { %v223_v32 = vmin.f32 %v205_v17, 0.0  ;;  %277 = vst.msk [vmem:[%s682_s3 + $0x70] sm:$0x3] %vm264_vm1, %v257_v29  ;;  %v240_v36 = vmul.f32 %v222_v31, %v186_v6 }
  0x55   :  { %v224_v37 = vmin.f32 %v206_v33, 0.0 }
  0x56   :  { %v241_v4 = vmul.f32 %v223_v32, %v187_v53  ;;  %v258_v8 = vmul.f32 0.16666667, %v240_v36 }
  0x57   :  { %v242_v41 = vmul.f32 %v224_v37, %v188_v60 }
  0x58   :  { %v259_v38 = vmul.f32 0.16666667, %v241_v4  ;;  %278 = vst.msk [vmem:[%s682_s3 + $0x78] sm:$0xff] %vm261_vm0, %v258_v8 }
  0x59   :  { %v260_v24 = vmul.f32 0.16666667, %v242_v41 }
  0x5a   :  { %279 = vst.msk [vmem:[%s682_s3 + $0x80] sm:$0xff] %vm261_vm0, %v259_v38 }
  0x5b   :  { %280 = vst.msk [vmem:[%s682_s3 + $0x88] sm:$0x3] %vm264_vm1, %v260_v24 }
  0x5c   :  { %285 = vsyncpa [#allocation3], 1 }
  0x5d   :  { %286 = vsyncpa [#allocation5], 1 }

</bundles_post_ra>
